<compile_context>
chip_gen: v7x
topology: tpu7x:2x2x1
jax: 0.10.0
libtpu: 0.0.40
codegen_flags: <defaults>
</compile_context>

<pallas_src>
import jax
import jax.numpy as jnp
from jax.experimental import pallas as pl
from jax.experimental.pallas import tpu as pltpu


def _round_up(n: int, m: int) -> int:
    return ((n + m - 1) // m) * m


def _softplus(x):
    # Numerically-stable softplus matching nn.Softplus (beta=1).
    return jnp.maximum(x, 0.0) + jnp.log1p(jnp.exp(-jnp.abs(x)))


def encoder_kernel(x_ref, w_in_ref, b_in_ref, w_mid_ref, b_mid_ref,
                   w0_ref, b0_ref, w1_ref, b1_ref, out_ref):
    x = x_ref[...]                        # [TB, 1 + design_dim]; column 0 holds y
    y = x[:, 0:1]                         # [TB, 1]  (offset-0 lane slice)

    # Input layer (t/T already folded into b_in) + Softplus.  The y column hits a
    # zeroed weight row, so it does not perturb the matmul.
    h = _softplus(jnp.dot(x, w_in_ref[...],
                          preferred_element_type=jnp.float32) + b_in_ref[...])
    # middle = Sequential(Linear(hidden, hidden), Softplus())   (n_hidden_layers = 2)
    h = _softplus(jnp.dot(h, w_mid_ref[...],
                          preferred_element_type=jnp.float32) + b_mid_ref[...])

    # Two output heads + y-gated mixing.
    x0 = jnp.dot(h, w0_ref[...], preferred_element_type=jnp.float32) + b0_ref[...]
    x1 = jnp.dot(h, w1_ref[...], preferred_element_type=jnp.float32) + b1_ref[...]
    out_ref[...] = y * x1 + (1.0 - y) * x0


def encoder_forward(xi, y, t, params, *, include_t=True, T=10.0, block_rows=512):
    """Pallas implementation of EncoderNetwork.forward(xi, y, t).

    xi: [..., design_dim] designs; y: [...] observations; t: scalar step index.
    """
    xi = jnp.asarray(xi, jnp.float32)
    y = jnp.asarray(y, jnp.float32)

    w_in = params["w_in"]
    b_in = params["b_in"]
    hidden = w_in.shape[1]

    if include_t:
        # torch: x = cat([lexpand(t/T, ...), xi], -1).  t/T is a scalar per call,
        # so fold it into the bias instead of materializing an extra feature column.
        scale = jnp.float32(t) / jnp.float32(T)
        b_in_eff = b_in + scale * w_in[0:1, :]
        w_xi = w_in[1:, :]
    else:
        b_in_eff = b_in
        w_xi = w_in

    design_dim = w_xi.shape[0]
    assert xi.shape[-1] == design_dim, "xi feature dim must match the input layer"

    # y goes into column 0 of the packed input; its weight row is zero.
    w_in_packed = jnp.concatenate(
        [jnp.zeros((1, hidden), w_xi.dtype), w_xi], axis=0)        # [1+D, H]

    batch_shape = xi.shape[:-1]
    enc = params["w0"].shape[1]

    x2 = xi.reshape(-1, design_dim)
    y2 = y.reshape(-1, 1)
    x_packed = jnp.concatenate([y2, x2], axis=-1)                  # [B, 1+D]
    B, F = x_packed.shape

    # Batch tile: multiple of 8 (sublane constraint), capped at block_rows.
    tb = _round_up(min(block_rows, _round_up(B, 8)), 8)
    bp = _round_up(B, tb)
    if bp != B:
        x_packed = jnp.pad(x_packed, ((0, bp - B), (0, 0)))
    grid = (bp // tb,)

    def resident(arr):
        # Whole array as a single block with a constant block index: the weights
        # and biases stay resident in VMEM across all grid steps (no re-DMA).
        return pl.BlockSpec(arr.shape, lambda i: (0, 0))

    # NOTE: for very large batches on v6e, feeding bf16 into the dots (keeping the
    # softplus/gating in f32) would halve the x-stream bandwidth; kept f32 here to
    # match the reference numerics exactly.
    out = pl.pallas_call(
        encoder_kernel,
        out_shape=jax.ShapeDtypeStruct((bp, enc), jnp.float32),
        grid=grid,
        in_specs=[
            pl.BlockSpec((tb, F), lambda i: (i, 0)),
            resident(w_in_packed), resident(b_in_eff),
            resident(params["w_mid"]), resident(params["b_mid"]),
            resident(params["w0"]), resident(params["b0"]),
            resident(params["w1"]), resident(params["b1"]),
        ],
        out_specs=pl.BlockSpec((tb, enc), lambda i: (i, 0)),
        compiler_params=pltpu.CompilerParams(
            dimension_semantics=("parallel",)),
    )(x_packed, w_in_packed, b_in_eff,
      params["w_mid"], params["b_mid"],
      params["w0"], params["b0"],
      params["w1"], params["b1"])

    out = out[:B]
    return out.reshape(*batch_shape, enc)


def _init_linear(kw, kb, fan_in, fan_out):
    # PyTorch nn.Linear default init: U(-1/sqrt(fan_in), +1/sqrt(fan_in)).
    bound = 1.0 / (fan_in ** 0.5)
    w = jax.random.uniform(kw, (fan_in, fan_out), jnp.float32, -bound, bound)
    b = jax.random.uniform(kb, (1, fan_out), jnp.float32, -bound, bound)
    return w, b


if __name__ == "__main__":
    # Module hyper-parameters (small, consistent with the forward pass).
    design_dim = 4
    hidden_dim = 32
    encoding_dim = 16
    include_t = True
    T = 10.0
    n_hidden_layers = 2          # -> exactly one middle (Linear + Softplus) block

    input_dim = design_dim + 1 if include_t else design_dim

    key = jax.random.PRNGKey(0)
    keys = jax.random.split(key, 10)

    w_in, b_in = _init_linear(keys[0], keys[1], input_dim, hidden_dim)
    w_mid, b_mid = _init_linear(keys[2], keys[3], hidden_dim, hidden_dim)
    w0, b0 = _init_linear(keys[4], keys[5], hidden_dim, encoding_dim)
    w1, b1 = _init_linear(keys[6], keys[7], hidden_dim, encoding_dim)

    params = dict(w_in=w_in, b_in=b_in, w_mid=w_mid, b_mid=b_mid,
                  w0=w0, b0=b0, w1=w1, b1=b1)

    # Small example: batch of 2 experiments x 9 parallel rollouts.
    xi = jax.random.normal(keys[8], (2, 9, design_dim), jnp.float32)      # designs
    y = (jax.random.uniform(keys[9], (2, 9)) > 0.5).astype(jnp.float32)   # binary obs
    t = 3.0                                                               # current step

    # Pure-JAX reference of the original (concat-based, unpacked) forward pass.
    t_feat = jnp.full(xi.shape[:-1] + (1,), jnp.float32(t) / jnp.float32(T))
    x_full = jnp.concatenate([t_feat, xi], axis=-1)
    h = jax.nn.softplus(x_full @ w_in + b_in)
    h = jax.nn.softplus(h @ w_mid + b_mid)
    ref = y[..., None] * (h @ w1 + b1) + (1.0 - y)[..., None] * (h @ w0 + b0)

    # 1) Default tile size (all 18 rows fit in one grid step, with row padding).
    out = encoder_forward(xi, y, t, params, include_t=include_t, T=T)
    out = jax.block_until_ready(out)
    assert out.shape == (2, 9, encoding_dim)
    assert jnp.allclose(out, ref, atol=1e-5, rtol=1e-5)

    # 2) Multi-step grid (block_rows=8 -> grid=(3,)), exercising the batch
    #    pipeline, resident weights, and the row-padding path.
    out_tiled = encoder_forward(xi, y, t, params, include_t=include_t, T=T,
                                block_rows=8)
    out_tiled = jax.block_until_ready(out_tiled)
    assert jnp.allclose(out_tiled, ref, atol=1e-5, rtol=1e-5)

    print("KERNEL_OK")
</pallas_src>

<mosaic_0001>
module attributes {stable_mosaic.version = 11 : i64} {
  func.func @encoder_kernel(%arg0: i32, %arg1: memref<24x5xf32, #tpu.memory_space<vmem>>, %arg2: memref<5x32xf32, #tpu.memory_space<vmem>>, %arg3: memref<1x32xf32, #tpu.memory_space<vmem>>, %arg4: memref<32x32xf32, #tpu.memory_space<vmem>>, %arg5: memref<1x32xf32, #tpu.memory_space<vmem>>, %arg6: memref<32x16xf32, #tpu.memory_space<vmem>>, %arg7: memref<1x16xf32, #tpu.memory_space<vmem>>, %arg8: memref<32x16xf32, #tpu.memory_space<vmem>>, %arg9: memref<1x16xf32, #tpu.memory_space<vmem>>, %arg10: memref<24x16xf32, #tpu.memory_space<vmem>>) attributes {dimension_semantics = [#tpu.dimension_semantics<parallel>], iteration_bounds = array<i64: 1>, scalar_prefetch = 0 : i64, scratch_operands = 0 : i64, tpu.core_type = #tpu.core_type<tc>, window_params = [{transform_indices = @transform_0, window_bounds = array<i64: 24, 5>}, {pipeline_mode = #tpu.pipeline_mode<synchronous>, transform_indices = @transform_1, window_bounds = array<i64: 5, 32>}, {pipeline_mode = #tpu.pipeline_mode<synchronous>, transform_indices = @transform_2, window_bounds = array<i64: 1, 32>}, {pipeline_mode = #tpu.pipeline_mode<synchronous>, transform_indices = @transform_3, window_bounds = array<i64: 32, 32>}, {pipeline_mode = #tpu.pipeline_mode<synchronous>, transform_indices = @transform_4, window_bounds = array<i64: 1, 32>}, {pipeline_mode = #tpu.pipeline_mode<synchronous>, transform_indices = @transform_5, window_bounds = array<i64: 32, 16>}, {pipeline_mode = #tpu.pipeline_mode<synchronous>, transform_indices = @transform_6, window_bounds = array<i64: 1, 16>}, {pipeline_mode = #tpu.pipeline_mode<synchronous>, transform_indices = @transform_7, window_bounds = array<i64: 32, 16>}, {pipeline_mode = #tpu.pipeline_mode<synchronous>, transform_indices = @transform_8, window_bounds = array<i64: 1, 16>}, {transform_indices = @transform_9, window_bounds = array<i64: 24, 16>}]} {
    %c0 = arith.constant 0 : index
    %c0_0 = arith.constant 0 : index
    %0 = vector.load %arg1[%c0, %c0_0] : memref<24x5xf32, #tpu.memory_space<vmem>>, vector<24x5xf32>
    %1 = vector.extract_strided_slice %0 {offsets = [0, 0], sizes = [24, 1], strides = [1, 1]} : vector<24x5xf32> to vector<24x1xf32>
    %c0_1 = arith.constant 0 : index
    %c0_2 = arith.constant 0 : index
    %2 = vector.load %arg2[%c0_1, %c0_2] : memref<5x32xf32, #tpu.memory_space<vmem>>, vector<5x32xf32>
    %cst = arith.constant dense<0.000000e+00> : vector<24x32xf32>
    %3 = tpu.matmul %0, %2, %cst {dimension_numbers = #tpu.dot_dimension_numbers<[1], [0], [0], [1], [0, 0, 1, 1], [], []>} : vector<24x5xf32>, vector<5x32xf32>, vector<24x32xf32> -> vector<24x32xf32>
    %c0_3 = arith.constant 0 : index
    %c0_4 = arith.constant 0 : index
    %4 = vector.load %arg3[%c0_3, %c0_4] : memref<1x32xf32, #tpu.memory_space<vmem>>, vector<1x32xf32>
    %5 = vector.broadcast %4 : vector<1x32xf32> to vector<24x32xf32>
    %6 = arith.addf %3, %5 : vector<24x32xf32>
    %cst_5 = arith.constant 0.000000e+00 : f32
    %7 = vector.broadcast %cst_5 : f32 to vector<24x32xf32>
    %8 = arith.maximumf %6, %7 : vector<24x32xf32>
    %9 = math.absf %6 : vector<24x32xf32>
    %cst_6 = arith.constant 0.000000e+00 : f32
    %10 = vector.broadcast %cst_6 : f32 to vector<24x32xf32>
    %11 = arith.subf %10, %9 : vector<24x32xf32>
    %12 = math.exp %11 : vector<24x32xf32>
    %13 = math.log1p %12 : vector<24x32xf32>
    %14 = arith.addf %8, %13 : vector<24x32xf32>
    %c0_7 = arith.constant 0 : index
    %c0_8 = arith.constant 0 : index
    %15 = vector.load %arg4[%c0_7, %c0_8] : memref<32x32xf32, #tpu.memory_space<vmem>>, vector<32x32xf32>
    %cst_9 = arith.constant dense<0.000000e+00> : vector<24x32xf32>
    %16 = tpu.matmul %14, %15, %cst_9 {dimension_numbers = #tpu.dot_dimension_numbers<[1], [0], [0], [1], [0, 0, 1, 1], [], []>} : vector<24x32xf32>, vector<32x32xf32>, vector<24x32xf32> -> vector<24x32xf32>
    %c0_10 = arith.constant 0 : index
    %c0_11 = arith.constant 0 : index
    %17 = vector.load %arg5[%c0_10, %c0_11] : memref<1x32xf32, #tpu.memory_space<vmem>>, vector<1x32xf32>
    %18 = vector.broadcast %17 : vector<1x32xf32> to vector<24x32xf32>
    %19 = arith.addf %16, %18 : vector<24x32xf32>
    %cst_12 = arith.constant 0.000000e+00 : f32
    %20 = vector.broadcast %cst_12 : f32 to vector<24x32xf32>
    %21 = arith.maximumf %19, %20 : vector<24x32xf32>
    %22 = math.absf %19 : vector<24x32xf32>
    %cst_13 = arith.constant 0.000000e+00 : f32
    %23 = vector.broadcast %cst_13 : f32 to vector<24x32xf32>
    %24 = arith.subf %23, %22 : vector<24x32xf32>
    %25 = math.exp %24 : vector<24x32xf32>
    %26 = math.log1p %25 : vector<24x32xf32>
    %27 = arith.addf %21, %26 : vector<24x32xf32>
    %c0_14 = arith.constant 0 : index
    %c0_15 = arith.constant 0 : index
    %28 = vector.load %arg6[%c0_14, %c0_15] : memref<32x16xf32, #tpu.memory_space<vmem>>, vector<32x16xf32>
    %cst_16 = arith.constant dense<0.000000e+00> : vector<24x16xf32>
    %29 = tpu.matmul %27, %28, %cst_16 {dimension_numbers = #tpu.dot_dimension_numbers<[1], [0], [0], [1], [0, 0, 1, 1], [], []>} : vector<24x32xf32>, vector<32x16xf32>, vector<24x16xf32> -> vector<24x16xf32>
    %c0_17 = arith.constant 0 : index
    %c0_18 = arith.constant 0 : index
    %30 = vector.load %arg7[%c0_17, %c0_18] : memref<1x16xf32, #tpu.memory_space<vmem>>, vector<1x16xf32>
    %31 = vector.broadcast %30 : vector<1x16xf32> to vector<24x16xf32>
    %32 = arith.addf %29, %31 : vector<24x16xf32>
    %c0_19 = arith.constant 0 : index
    %c0_20 = arith.constant 0 : index
    %33 = vector.load %arg8[%c0_19, %c0_20] : memref<32x16xf32, #tpu.memory_space<vmem>>, vector<32x16xf32>
    %cst_21 = arith.constant dense<0.000000e+00> : vector<24x16xf32>
    %34 = tpu.matmul %27, %33, %cst_21 {dimension_numbers = #tpu.dot_dimension_numbers<[1], [0], [0], [1], [0, 0, 1, 1], [], []>} : vector<24x32xf32>, vector<32x16xf32>, vector<24x16xf32> -> vector<24x16xf32>
    %c0_22 = arith.constant 0 : index
    %c0_23 = arith.constant 0 : index
    %35 = vector.load %arg9[%c0_22, %c0_23] : memref<1x16xf32, #tpu.memory_space<vmem>>, vector<1x16xf32>
    %36 = vector.broadcast %35 : vector<1x16xf32> to vector<24x16xf32>
    %37 = arith.addf %34, %36 : vector<24x16xf32>
    %38 = vector.broadcast %1 : vector<24x1xf32> to vector<24x16xf32>
    %39 = arith.mulf %38, %37 : vector<24x16xf32>
    %cst_24 = arith.constant 1.000000e+00 : f32
    %40 = vector.broadcast %cst_24 : f32 to vector<24x1xf32>
    %41 = arith.subf %40, %1 : vector<24x1xf32>
    %42 = vector.broadcast %41 : vector<24x1xf32> to vector<24x16xf32>
    %43 = arith.mulf %42, %32 : vector<24x16xf32>
    %44 = arith.addf %39, %43 : vector<24x16xf32>
    %c0_25 = arith.constant 0 : index
    %c0_26 = arith.constant 0 : index
    %45 = vector.load %arg10[%c0_25, %c0_26] : memref<24x16xf32, #tpu.memory_space<vmem>>, vector<24x16xf32>
    tpu.vector_store %arg10[%c0_25, %c0_26], %44 {strides = array<i32>} : memref<24x16xf32, #tpu.memory_space<vmem>>, vector<24x16xf32>,
    return
  }
  func.func @transform_0(%arg0: i32) -> (i32, i32) {
    %c0_i32 = arith.constant 0 : i32
    %c0_i32_0 = arith.constant 0 : i32
    return %arg0, %c0_i32 : i32, i32
  }
  func.func @transform_1(%arg0: i32) -> (i32, i32) {
    %c0_i32 = arith.constant 0 : i32
    %c0_i32_0 = arith.constant 0 : i32
    %c0_i32_1 = arith.constant 0 : i32
    return %c0_i32, %c0_i32_0 : i32, i32
  }
  func.func @transform_2(%arg0: i32) -> (i32, i32) {
    %c0_i32 = arith.constant 0 : i32
    %c0_i32_0 = arith.constant 0 : i32
    %c0_i32_1 = arith.constant 0 : i32
    return %c0_i32, %c0_i32_0 : i32, i32
  }
  func.func @transform_3(%arg0: i32) -> (i32, i32) {
    %c0_i32 = arith.constant 0 : i32
    %c0_i32_0 = arith.constant 0 : i32
    %c0_i32_1 = arith.constant 0 : i32
    return %c0_i32, %c0_i32_0 : i32, i32
  }
  func.func @transform_4(%arg0: i32) -> (i32, i32) {
    %c0_i32 = arith.constant 0 : i32
    %c0_i32_0 = arith.constant 0 : i32
    %c0_i32_1 = arith.constant 0 : i32
    return %c0_i32, %c0_i32_0 : i32, i32
  }
  func.func @transform_5(%arg0: i32) -> (i32, i32) {
    %c0_i32 = arith.constant 0 : i32
    %c0_i32_0 = arith.constant 0 : i32
    %c0_i32_1 = arith.constant 0 : i32
    return %c0_i32, %c0_i32_0 : i32, i32
  }
  func.func @transform_6(%arg0: i32) -> (i32, i32) {
    %c0_i32 = arith.constant 0 : i32
    %c0_i32_0 = arith.constant 0 : i32
    %c0_i32_1 = arith.constant 0 : i32
    return %c0_i32, %c0_i32_0 : i32, i32
  }
  func.func @transform_7(%arg0: i32) -> (i32, i32) {
    %c0_i32 = arith.constant 0 : i32
    %c0_i32_0 = arith.constant 0 : i32
    %c0_i32_1 = arith.constant 0 : i32
    return %c0_i32, %c0_i32_0 : i32, i32
  }
  func.func @transform_8(%arg0: i32) -> (i32, i32) {
    %c0_i32 = arith.constant 0 : i32
    %c0_i32_0 = arith.constant 0 : i32
    %c0_i32_1 = arith.constant 0 : i32
    return %c0_i32, %c0_i32_0 : i32, i32
  }
  func.func @transform_9(%arg0: i32) -> (i32, i32) {
    %c0_i32 = arith.constant 0 : i32
    %c0_i32_0 = arith.constant 0 : i32
    return %arg0, %c0_i32 : i32, i32
  }
}

</mosaic_0001>

<bundles_post_ra>
// kernel: tpu_custom_call.1
= control target key start
LH: loop header
LB: loop body
LE: loop exit
PB: predicated region body
PF: predicated region fallthrough
CT: control target
= control target key end

     0   :  { %vm53_vm0 = vcmask 1044480   ;;  %vm43_vm1 = vcmask 39936   ;;  %v718_v0 = vmov 0.0   ;;  %vm719_vm2 = vmmov 0   ;;  %s899_s1 = inlined_call_operand.vmem [shape: f32[5,32], index: 1, kind: input, shape index: {}]   ;;  %s900_s0 = inlined_call_operand.vmem [shape: f32[24,5], index: 0, kind: input, shape index: {}]   ;;  %s901_s3 = inlined_call_operand.vmem [shape: f32[32,32], index: 3, kind: input, shape index: {}]   ;;  %s902_s2 = inlined_call_operand.vmem [shape: f32[1,32], index: 2, kind: input, shape index: {}]   ;;  %s903_s5 = inlined_call_operand.vmem [shape: f32[32,16], index: 5, kind: input, shape index: {}]   ;;  %s904_s7 = inlined_call_operand.vmem [shape: f32[32,16], index: 7, kind: input, shape index: {}]   ;;  %s905_s4 = inlined_call_operand.vmem [shape: f32[1,32], index: 4, kind: input, shape index: {}]   ;;  %s906_s6 = inlined_call_operand.vmem [shape: f32[1,16], index: 6, kind: input, shape index: {}]   ;;  %s907_s8 = inlined_call_operand.vmem [shape: f32[1,16], index: 8, kind: input, shape index: {}]   ;;  %s908_s9 = inlined_call_operand.vmem [shape: f32[24,16], index: 9, kind: output, shape index: {}]  }
   0x1   :  { %608 = vmatprep.subr.mxu0 %v718_v0  ;;  %v35_v1 = vld [vmem:[%s899_s1] sm:$0x1f]  ;;  %610 = vmatprep.mubr.msk.f32.mxu0 %vm719_vm2, %v718_v0  ;;  %v791_v3 = vld [vmem:[%s900_s0 + $0x8] sm:$0xff]  ;;  %v799_v4 = vld [vmem:[%s900_s0 + $0x10] sm:$0xff]  ;;  %v720_v8 = vmov 0.0|0.0   ;;  %vm193_vm4 = vcmask 261120  }
   0x2   :  { %v781_v2 = vld [vmem:[%s900_s0] sm:$0xff]  ;;  %609 = vmatpush3.msk.msra.mxu0 %vm53_vm0, %v35_v1  ;;  %627 = vmatprep.mubr.msk.f32.mxu1 %vm719_vm2, %v718_v0  ;;  %v183_v6 = vld [vmem:[%s901_s3 + $0x8] sm:$0xff]  ;;  %v184_v9 = vld [vmem:[%s901_s3 + $0x10] sm:$0xff]  ;;  %vm558_vm10 = vcmask 130048  }
   0x3   :  { %611 = vmatmul.mubr.msk.f32.vlgmr.msra.gmra.mrb[0].mxu0 %vm43_vm1, %v781_v2  ;;  %v182_v5 = vld [vmem:[%s901_s3] sm:$0xff]  ;;  %670 = vmatprep.subr.bf16.mxu1 %v720_v8  ;;  %v185_v10 = vld [vmem:[%s901_s3 + $0x18] sm:$0xff] }
   0x4   :  { %613 = vmatprep.mubr.msk.f32.mxu0 %vm719_vm2, %v718_v0  ;;  %v671_v7 = vpack.c.bf16 %v183_v6, %v182_v5  ;;  %676 = vmatprep.subr.bf16.mxu0 %v720_v8  ;;  %v674_v11 = vpack.c.bf16 %v185_v10, %v184_v9  ;;  %v566_v12 = vld [vmem:[%s902_s2] ss:$0 sm:$0xff]  ;;  %v329_v5 = vld [vmem:[%s903_s5 + $0x8] sm:$0xff] }
   0x5   :  { %v328_v1 = vld [vmem:[%s903_s5] sm:$0xff]  ;;  %v429_v9 = vld [vmem:[%s904_s7 + $0x8] sm:$0xff] }
   0x6   :  { %672 = vmatpush3.bf16.msra.mxu1 %v671_v7  ;;  %v428_v6 = vld [vmem:[%s904_s7] sm:$0xff]  ;;  %v677_v7 = vpack.c.bf16 %v329_v5, %v328_v1 }
   0x7   :  { %614 = vmatmul.mubr.msk.f32.gmra.mrb[2].mxu0 %vm43_vm1, %v791_v3  ;;  %673 = vmatprep.subr.bf16.mxu1 %v720_v8  ;;  %v683_v10 = vpack.c.bf16 %v429_v9, %v428_v6 }
   0x8   :  { %616 = vmatprep.mubr.msk.f32.mxu0 %vm719_vm2, %v718_v0  ;;  %678 = vmatpush3.bf16.msra.mxu0 %v677_v7 }
   0x9   :  { %679 = vmatprep.subr.bf16.mxu0 %v720_v8 }
   0xa   :  { %675 = vmatpush3.bf16.msra.mxu1 %v674_v11  ;;  %v330_v11 = vld [vmem:[%s903_s5 + $0x10] sm:$0xff] }
   0xb   :  { %617 = vmatmul.mubr.msk.f32.gmra.mrb[4].mxu0 %vm43_vm1, %v799_v4  ;;  %682 = vmatprep.subr.bf16.mxu1 %v720_v8 }
   0xc   :  { %644 = vmatprep.mubr.msk.f32.mxu0 %vm719_vm2, %v718_v0 }
  0xd6   :  { %v123_v13 = vpop.f32.mrb[0].mxu0 }
  0xd7   :  { %v124_v14 = vadd.f32 %v566_v12, %v123_v13  ;;  %v612_v15 = vpop.f32.mrb[1].mxu0  ;;  %v430_v13 = vld [vmem:[%s904_s7 + $0x10] sm:$0xff] }
  0xd8   :  { %v431_v15 = vld [vmem:[%s904_s7 + $0x18] sm:$0xff] }
  0xd9   :  { %v140_v16 = vand.u32 2147483647, %v124_v14  ;;  %v137_v46 = vmax.f32 %v124_v14, 0.0 }
  0xda   :  { %v128_v17 = vpop.f32.mrb[2].mxu0 }
  0xdb   :  { %v143_v18 = vsub.f32 0.0, %v140_v16  ;;  %v129_v19 = vadd.f32 %v566_v12, %v128_v17  ;;  %v615_v20 = vpop.f32.mrb[3].mxu0  ;;  %v686_v16 = vpack.c.bf16 %v431_v15, %v430_v13  ;;  %v721_v17 = vmov 0   ;;  %v579_v13 = vld [vmem:[%s907_s8] ss:$0 sm:$0xff] }
  0xdc   :  { %693 = vset.pattern.permute.xlu1 %v721_v17  ;;  %692 = vset.pattern.permute.xlu0 %v721_v17  ;;  %v571_v20 = vld [vmem:[%s905_s4] ss:$0 sm:$0xff] }
  0xdd   :  { %v146_v21 = vmul.f32 1.442695, %v143_v18  ;;  %v141_v22 = vand.u32 2147483647, %v129_v19  ;;  %v138_v54 = vmax.f32 %v129_v19, 0.0  ;;  %528 = vperm.xlu1 %693, %v799_v4   ;;  %520 = vperm.xlu0 %692, %v781_v2   ;;  %v534_v18 = vsub.f32 1.0, %v781_v2 }
  0xde   :  { %v133_v23 = vpop.f32.mrb[4].mxu0  ;;  %v536_v19 = vsub.f32 1.0, %v799_v4 }
  0xdf   :  { %694 = vpow2.f32 %v146_v21  ;;  %v144_v24 = vsub.f32 0.0, %v141_v22  ;;  %v134_v25 = vadd.f32 %v566_v12, %v133_v23  ;;  %v618_v26 = vpop.f32.mrb[5].mxu0  ;;  %v331_v12 = vld [vmem:[%s903_s5 + $0x18] sm:$0xff] }
  0xe0   :  { %v680_v14 = vpack.c.bf16 %v331_v12, %v330_v11  ;;  %v575_v12 = vld [vmem:[%s906_s6] ss:$0 sm:$0xff] }
  0xe1   :  { %v148_v27 = vmul.f32 1.442695, %v144_v24  ;;  %v142_v28 = vand.u32 2147483647, %v134_v25  ;;  %v139_v61 = vmax.f32 %v134_v25, 0.0  ;;  %524 = vperm.xlu0 %692, %v791_v3   ;;  %539 = vperm.xlu1 %693, %v534_v18  }
  0xe2   :  { %681 = vmatpush3.bf16.msra.mxu0 %v680_v14 }
  0xe3   :  { %696 = vpow2.f32 %v148_v27  ;;  %v145_v29 = vsub.f32 0.0, %v142_v28 }
  0xe5   :  { %v150_v30 = vmul.f32 1.442695, %v145_v29  ;;  %549 = vperm.xlu1 %693, %v536_v19  }
  0xe7   :  { %698 = vpow2.f32 %v150_v30 }
  0xe9   :  { %v695_v31 = vpop.eup %694 }
  0xea   :  { %v152_v32 = vadd.f32 1.0, %v695_v31  ;;  %v155_v35 = vmul.f32 -0.5, %v695_v31  ;;  %v158_v40 = vand.u32 2147483647, %v695_v31 }
  0xec   :  { %700 = vlog2.f32 %v152_v32  ;;  %v156_v38 = vadd.f32 1.0, %v155_v35  ;;  %vm159_vm3 = vcmp.lt.f32.partialorder %v158_v40, 0.0004427343 }
  0xed   :  { %v697_v33 = vpop.eup %696 }
  0xee   :  { %v161_v34 = vadd.f32 1.0, %v697_v33  ;;  %v164_v39 = vmul.f32 -0.5, %v697_v33  ;;  %v157_v43 = vmul.f32 %v695_v31, %v156_v38  ;;  %v167_v47 = vand.u32 2147483647, %v697_v33 }
  0xf0   :  { %702 = vlog2.f32 %v161_v34  ;;  %v165_v44 = vadd.f32 1.0, %v164_v39  ;;  %vm168_vm5 = vcmp.lt.f32.partialorder %v167_v47, 0.0004427343 }
  0xf1   :  { %v699_v36 = vpop.eup %698 }
  0xf2   :  { %v170_v37 = vadd.f32 1.0, %v699_v36  ;;  %v173_v45 = vmul.f32 -0.5, %v699_v36  ;;  %v166_v52 = vmul.f32 %v697_v33, %v165_v44  ;;  %v176_v55 = vand.u32 2147483647, %v699_v36 }
  0xf4   :  { %704 = vlog2.f32 %v170_v37  ;;  %v174_v53 = vadd.f32 1.0, %v173_v45  ;;  %vm177_vm6 = vcmp.lt.f32.partialorder %v176_v55, 0.0004427343 }
  0xf6   :  { %v701_v41 = vpop.eup %700  ;;  %v175_v60 = vmul.f32 %v699_v36, %v174_v53 }
  0xf7   :  { %v154_v42 = vmul.f32 0.6931472, %v701_v41 }
  0xf9   :  { %v160_v48 = vsel %vm159_vm3, %v157_v43, %v154_v42 }
  0xfa   :  { %v703_v49 = vpop.eup %702  ;;  %v179_v50 = vadd.f32 %v160_v48, %v137_v46 }
  0xfb   :  { %v163_v51 = vmul.f32 0.6931472, %v703_v49 }
  0xfc   :  { %628 = vmatmul.mubr.msk.f32.vlgmr.msra.gmra.mrb[0].mxu1 %vm193_vm4, %v179_v50 }
  0xfd   :  { %v169_v56 = vsel %vm168_vm5, %v166_v52, %v163_v51  ;;  %630 = vmatprep.mubr.msk.f32.mxu1 %vm719_vm2, %v718_v0  ;;  %684 = vmatpush3.bf16.msra.mxu1 %v683_v10 }
  0xfe   :  { %v705_v57 = vpop.eup %704  ;;  %v180_v58 = vadd.f32 %v169_v56, %v138_v54  ;;  %685 = vmatprep.subr.bf16.mxu1 %v720_v8  ;;  %v535_v8 = vsub.f32 1.0, %v791_v3 }
  0xff   :  { %v172_v59 = vmul.f32 0.6931472, %v705_v57 }
 0x100   :  { %631 = vmatmul.mubr.msk.f32.gmra.mrb[2].mxu1 %vm193_vm4, %v180_v58  ;;  %544 = vperm.xlu0 %692, %v535_v8  }
 0x101   :  { %v178_v62 = vsel %vm177_vm6, %v175_v60, %v172_v59  ;;  %633 = vmatprep.mubr.msk.f32.mxu1 %vm719_vm2, %v718_v0  ;;  %687 = vmatpush3.bf16.msra.mxu1 %v686_v16 }
 0x102   :  { %v181_v63 = vadd.f32 %v178_v62, %v139_v61 }
 0x104   :  { %634 = vmatmul.mubr.msk.f32.gmra.mrb[4].mxu1 %vm193_vm4, %v181_v63 }
 0x105   :  { %661 = vmatprep.mubr.msk.f32.mxu1 %vm719_vm2, %v718_v0 }
 0x15c   :  { %v521_v10 = vpop.permute.xlu0 %520  ;;  %v529_v11 = vpop.permute.xlu1 %528 }
 0x160   :  { %v525_v14 = vpop.permute.xlu0 %524  ;;  %v540_v19 = vpop.permute.xlu1 %539 }
 0x1cf   :  { %v269_v21 = vpop.f32.mrb[0].mxu1 }
 0x1d0   :  { %v270_v22 = vadd.f32 %v571_v20, %v269_v21  ;;  %v629_v23 = vpop.f32.mrb[1].mxu1 }
 0x1d2   :  { %v286_v24 = vand.u32 2147483647, %v270_v22  ;;  %v283_v51 = vmax.f32 %v270_v22, 0.0 }
 0x1d3   :  { %v274_v25 = vpop.f32.mrb[2].mxu1 }
 0x1d4   :  { %v289_v26 = vsub.f32 0.0, %v286_v24  ;;  %v275_v2 = vadd.f32 %v571_v20, %v274_v25  ;;  %v632_v27 = vpop.f32.mrb[3].mxu1 }
 0x1d6   :  { %v292_v28 = vmul.f32 1.442695, %v289_v26  ;;  %v287_v29 = vand.u32 2147483647, %v275_v2  ;;  %v284_v59 = vmax.f32 %v275_v2, 0.0 }
 0x1d7   :  { %v279_v30 = vpop.f32.mrb[4].mxu1 }
 0x1d8   :  { %706 = vpow2.f32 %v292_v28  ;;  %v290_v3 = vsub.f32 0.0, %v287_v29  ;;  %v280_v4 = vadd.f32 %v571_v20, %v279_v30  ;;  %v635_v31 = vpop.f32.mrb[5].mxu1  ;;  %v545_v28 = vpop.permute.xlu0 %544 }
 0x1da   :  { %v294_v32 = vmul.f32 1.442695, %v290_v3  ;;  %v288_v33 = vand.u32 2147483647, %v280_v4  ;;  %v285_v6 = vmax.f32 %v280_v4, 0.0 }
 0x1dc   :  { %708 = vpow2.f32 %v294_v32  ;;  %v291_v34 = vsub.f32 0.0, %v288_v33 }
 0x1de   :  { %v296_v35 = vmul.f32 1.442695, %v291_v34 }
 0x1e0   :  { %710 = vpow2.f32 %v296_v35 }
 0x1e2   :  { %v707_v36 = vpop.eup %706 }
 0x1e3   :  { %v298_v37 = vadd.f32 1.0, %v707_v36  ;;  %v301_v40 = vmul.f32 -0.5, %v707_v36  ;;  %v304_v45 = vand.u32 2147483647, %v707_v36 }
 0x1e5   :  { %712 = vlog2.f32 %v298_v37  ;;  %v302_v43 = vadd.f32 1.0, %v301_v40  ;;  %vm305_vm7 = vcmp.lt.f32.partialorder %v304_v45, 0.0004427343 }
 0x1e6   :  { %v709_v38 = vpop.eup %708 }
 0x1e7   :  { %v307_v39 = vadd.f32 1.0, %v709_v38  ;;  %v310_v44 = vmul.f32 -0.5, %v709_v38  ;;  %v303_v48 = vmul.f32 %v707_v36, %v302_v43  ;;  %v313_v52 = vand.u32 2147483647, %v709_v38  ;;  %v550_v36 = vpop.permute.xlu1 %549 }
 0x1e9   :  { %714 = vlog2.f32 %v307_v39  ;;  %v311_v49 = vadd.f32 1.0, %v310_v44  ;;  %vm314_vm8 = vcmp.lt.f32.partialorder %v313_v52, 0.0004427343 }
 0x1ea   :  { %v711_v41 = vpop.eup %710 }
 0x1eb   :  { %v316_v42 = vadd.f32 1.0, %v711_v41  ;;  %v319_v50 = vmul.f32 -0.5, %v711_v41  ;;  %v312_v57 = vmul.f32 %v709_v38, %v311_v49  ;;  %v322_v60 = vand.u32 2147483647, %v711_v41 }
 0x1ed   :  { %716 = vlog2.f32 %v316_v42  ;;  %v320_v58 = vadd.f32 1.0, %v319_v50  ;;  %vm323_vm9 = vcmp.lt.f32.partialorder %v322_v60, 0.0004427343 }
 0x1ef   :  { %v713_v46 = vpop.eup %712  ;;  %v321_v5 = vmul.f32 %v711_v41, %v320_v58 }
 0x1f0   :  { %v300_v47 = vmul.f32 0.6931472, %v713_v46 }
 0x1f2   :  { %v306_v53 = vsel %vm305_vm7, %v303_v48, %v300_v47 }
 0x1f3   :  { %v715_v54 = vpop.eup %714  ;;  %v325_v55 = vadd.f32 %v306_v53, %v283_v51 }
 0x1f4   :  { %v309_v56 = vmul.f32 0.6931472, %v715_v54 }
 0x1f5   :  { %645 = vmatmul.mubr.msk.f32.vlgmr.msra.gmra.mrb[6].mxu0 %vm193_vm4, %v325_v55  ;;  %662 = vmatmul.mubr.msk.f32.vlgmr.msra.gmra.mrb[6].mxu1 %vm193_vm4, %v325_v55 }
 0x1f6   :  { %v315_v61 = vsel %vm314_vm8, %v312_v57, %v309_v56  ;;  %647 = vmatprep.mubr.msk.f32.mxu0 %vm719_vm2, %v718_v0  ;;  %664 = vmatprep.mubr.msk.f32.mxu1 %vm719_vm2, %v718_v0 }
 0x1f7   :  { %v717_v62 = vpop.eup %716  ;;  %v326_v63 = vadd.f32 %v315_v61, %v284_v59 }
 0x1f8   :  { %v318_v1 = vmul.f32 0.6931472, %v717_v62 }
 0x1f9   :  { %648 = vmatmul.mubr.msk.f32.gmra.mrb[8].mxu0 %vm193_vm4, %v326_v63  ;;  %665 = vmatmul.mubr.msk.f32.gmra.mrb[8].mxu1 %vm193_vm4, %v326_v63 }
 0x1fa   :  { %v324_v7 = vsel %vm323_vm9, %v321_v5, %v318_v1  ;;  %650 = vmatprep.mubr.msk.f32.mxu0 %vm719_vm2, %v718_v0  ;;  %667 = vmatprep.mubr.msk.f32.mxu1 %vm719_vm2, %v718_v0 }
 0x1fb   :  { %v327_v9 = vadd.f32 %v324_v7, %v285_v6 }
 0x1fd   :  { %651 = vmatmul.mubr.msk.f32.gmra.mrb[10].mxu0 %vm193_vm4, %v327_v9  ;;  %668 = vmatmul.mubr.msk.f32.gmra.mrb[10].mxu1 %vm193_vm4, %v327_v9 }
 0x2c8   :  { %v414_v15 = vpop.f32.mrb[6].mxu0  ;;  %v505_v16 = vpop.f32.mrb[6].mxu1 }
 0x2c9   :  { %v415_v17 = vadd.f32 %v575_v12, %v414_v15  ;;  %v506_v0 = vadd.f32 %v579_v13, %v505_v16  ;;  %v646_v18 = vpop.f32.mrb[7].mxu0  ;;  %v663_v8 = vpop.f32.mrb[7].mxu1 }
 0x2cb   :  { %v552_v20 = vmul.f32 %v540_v19, %v415_v17  ;;  %v531_v21 = vmul.f32 %v521_v10, %v506_v0 }
 0x2cc   :  { %v419_v22 = vpop.f32.mrb[8].mxu0  ;;  %v510_v23 = vpop.f32.mrb[8].mxu1 }
 0x2cd   :  { %v555_v24 = vadd.f32 %v552_v20, %v531_v21  ;;  %v420_v25 = vadd.f32 %v575_v12, %v419_v22  ;;  %v511_v26 = vadd.f32 %v579_v13, %v510_v23  ;;  %v649_v2 = vpop.f32.mrb[9].mxu0  ;;  %v666_v27 = vpop.f32.mrb[9].mxu1 }
 0x2cf   :  { %559 = vst.msk [vmem:[%s908_s9] sm:$0xff] %vm558_vm10, %v555_v24  ;;  %v553_v29 = vmul.f32 %v545_v28, %v420_v25  ;;  %v532_v30 = vmul.f32 %v525_v14, %v511_v26 }
 0x2d0   :  { %v424_v3 = vpop.f32.mrb[10].mxu0  ;;  %v515_v4 = vpop.f32.mrb[10].mxu1 }
 0x2d1   :  { %v556_v31 = vadd.f32 %v553_v29, %v532_v30  ;;  %v425_v32 = vadd.f32 %v575_v12, %v424_v3  ;;  %v516_v33 = vadd.f32 %v579_v13, %v515_v4  ;;  %v652_v34 = vpop.f32.mrb[11].mxu0  ;;  %v669_v35 = vpop.f32.mrb[11].mxu1 }
 0x2d3   :  { %560 = vst.msk [vmem:[%s908_s9 + $0x8] sm:$0xff] %vm558_vm10, %v556_v31  ;;  %v554_v37 = vmul.f32 %v550_v36, %v425_v32  ;;  %v533_v38 = vmul.f32 %v529_v11, %v516_v33 }
 0x2d5   :  { %v557_v39 = vadd.f32 %v554_v37, %v533_v38 }
 0x2d7   :  { %561 = vst.msk [vmem:[%s908_s9 + $0x10] sm:$0xff] %vm558_vm10, %v557_v39 }

</bundles_post_ra>
